<compile_context>
chip_gen: v5e
topology: v5e:2x2
jax: 0.10.0
libtpu: 0.0.40
codegen_flags: <defaults>
</compile_context>

<pallas_src>
import functools

import jax
import jax.numpy as jnp
from jax.experimental import pallas as pl
from jax.experimental.pallas import tpu as pltpu


def _round_up(x, m):
    return ((x + m - 1) // m) * m


def _fused_mlp_kernel(x_ref, w_first_ref, w_rest_ref, b_ref, o_ref, *, n_rest):
    """One batch-tile of the whole padded MLP.

    x_ref      : (TB, Din_pad)        flattened, zero-padded input tile
    w_first_ref: (Din_pad, P)         fc1 weight (pre-transposed, zero-padded)
    w_rest_ref : (n_rest, P, P)       hidden weights + fc2, stacked & padded
    b_ref      : (n_rest + 1, 1, P)   all biases, stacked & padded
    o_ref      : (TB, P)              padded, lane-dense output tile
    """
    # fc1 + ReLU
    h = jnp.dot(x_ref[...], w_first_ref[...], preferred_element_type=jnp.float32)
    h = jnp.maximum(h + b_ref[0], 0.0)

    # hidden layers + ReLU (straight-line unroll — see header comment)
    for i in range(n_rest - 1):
        h = jnp.dot(h, w_rest_ref[i], preferred_element_type=jnp.float32)
        h = jnp.maximum(h + b_ref[1 + i], 0.0)

    # fc2 (no ReLU)
    h = jnp.dot(h, w_rest_ref[n_rest - 1], preferred_element_type=jnp.float32)
    h = h + b_ref[n_rest]

    o_ref[...] = h.astype(o_ref.dtype)


def pack_params(params):
    """Zero-pad + stack raw params for the fused kernel.

    params: list of (w_t, b); w_t is (d_in, d_out) pre-transposed, b is (d_out,).
            params[0] = fc1, params[1:-1] = hidden layers, params[-1] = fc2.
    """
    input_dim = params[0][0].shape[0]
    widths = [w.shape[1] for w, _ in params]
    p_pad = _round_up(max(widths), 128)       # common lane-dense layer width
    din_pad = _round_up(input_dim, 128)

    def pad2(w, rows, cols):
        return jnp.pad(w, ((0, rows - w.shape[0]), (0, cols - w.shape[1])))

    w_first_pad = pad2(params[0][0], din_pad, p_pad)

    w_rest = [pad2(w, p_pad, p_pad) for w, _ in params[1:]]
    w_rest_stack = jnp.stack(w_rest, axis=0)                        # (n_rest, P, P)

    biases = [jnp.pad(b, (0, p_pad - b.shape[0])).reshape(1, p_pad)
              for _, b in params]
    b_stack = jnp.stack(biases, axis=0)                             # (n_layers, 1, P)

    return w_first_pad, w_rest_stack, b_stack, din_pad, p_pad


def fused_mlp_pallas(x_flat, packed, output_dim):
    """y = fc2(relu(... relu(fc1(x)) ...)) as a single fused Pallas kernel."""
    w_first_pad, w_rest_stack, b_stack, din_pad, p_pad = packed
    B, d_in = x_flat.shape
    n_rest = w_rest_stack.shape[0]

    # Sublane-pad the batch to a multiple of 8 (f32 vreg height) and tile it
    # with a "parallel" grid axis (v7x megacore; harmless elsewhere).
    b_pad = _round_up(max(B, 8), 8)
    tile_b = 128 if b_pad >= 128 else b_pad
    b_pad = _round_up(b_pad, tile_b)
    n_tiles = b_pad // tile_b

    x_pad = jnp.pad(x_flat, ((0, b_pad - B), (0, din_pad - d_in)))

    kernel = functools.partial(_fused_mlp_kernel, n_rest=n_rest)

    out_pad = pl.pallas_call(
        kernel,
        out_shape=jax.ShapeDtypeStruct((b_pad, p_pad), x_flat.dtype),
        grid=(n_tiles,),
        in_specs=[
            pl.BlockSpec((tile_b, din_pad), lambda i: (i, 0)),
            pl.BlockSpec((din_pad, p_pad), lambda i: (0, 0)),
            pl.BlockSpec((n_rest, p_pad, p_pad), lambda i: (0, 0, 0)),
            pl.BlockSpec((n_rest + 1, 1, p_pad), lambda i: (0, 0, 0)),
        ],
        out_specs=pl.BlockSpec((tile_b, p_pad), lambda i: (i, 0)),
        compiler_params=pltpu.CompilerParams(
            dimension_semantics=("parallel",)),
    )(x_pad, w_first_pad, w_rest_stack, b_stack)

    # Slice the real rows / columns back out (padding was all zeros).
    return out_pad[:B, :output_dim]


def init_params(key, input_dim, output_dim, hidden_size, hidden_number):
    """Deterministic init matching nn.Linear's U(-1/sqrt(fan_in), 1/sqrt(fan_in)).

    Weights are stored transposed: shape (in_features, out_features).
    """
    dims = [input_dim] + [hidden_size] * hidden_number + [output_dim]
    params = []
    for d_in, d_out in zip(dims[:-1], dims[1:]):
        kw, kb, key = jax.random.split(key, 3)
        bound = 1.0 / (d_in ** 0.5)
        w_t = jax.random.uniform(kw, (d_in, d_out), jnp.float32, -bound, bound)
        b = jax.random.uniform(kb, (d_out,), jnp.float32, -bound, bound)
        params.append((w_t, b))
    return params


def nn_linear_forward(params, x):
    # flatten (NCHW -> (B, C*H*W)); glue in plain JAX, then one fused kernel
    B = x.shape[0]
    h = x.reshape(B, -1)
    output_dim = params[-1][0].shape[1]
    packed = pack_params(params)
    return fused_mlp_pallas(h, packed, output_dim)


if __name__ == "__main__":
    # Small shapes: batch=2, channels=4, spatial=16x16 -> input_dim=1024
    B, C, H, W = 2, 4, 16, 16
    input_dim = C * H * W
    hidden_size = 32
    hidden_number = 3   # fc1 + (hidden_number - 1) hidden layers
    output_dim = 10

    key = jax.random.PRNGKey(0)
    kx, kp = jax.random.split(key)
    x = jax.random.normal(kx, (B, C, H, W), jnp.float32)

    params = init_params(kp, input_dim, output_dim, hidden_size, hidden_number)

    out = nn_linear_forward(params, x)
    out = jax.block_until_ready(out)

    # Pure-JAX reference check
    h_ref = x.reshape(B, -1)
    for idx, (w_t, b) in enumerate(params):
        h_ref = h_ref @ w_t + b
        if idx != len(params) - 1:
            h_ref = jnp.maximum(h_ref, 0.0)
    assert out.shape == (B, output_dim)
    assert jnp.allclose(out, h_ref, atol=1e-4, rtol=1e-4)

    print("KERNEL_OK")
</pallas_src>

<mosaic_0001>
module attributes {stable_mosaic.version = 11 : i64} {
  func.func @_fused_mlp_kernel(%arg0: i32, %arg1: memref<8x1024xf32, #tpu.memory_space<vmem>>, %arg2: memref<1024x128xf32, #tpu.memory_space<vmem>>, %arg3: memref<3x128x128xf32, #tpu.memory_space<vmem>>, %arg4: memref<4x1x128xf32, #tpu.memory_space<vmem>>, %arg5: memref<8x128xf32, #tpu.memory_space<vmem>>) attributes {dimension_semantics = [#tpu.dimension_semantics<parallel>], iteration_bounds = array<i64: 1>, scalar_prefetch = 0 : i64, scratch_operands = 0 : i64, tpu.core_type = #tpu.core_type<tc>, window_params = [{transform_indices = @transform_0, window_bounds = array<i64: 8, 1024>}, {pipeline_mode = #tpu.pipeline_mode<synchronous>, transform_indices = @transform_1, window_bounds = array<i64: 1024, 128>}, {pipeline_mode = #tpu.pipeline_mode<synchronous>, transform_indices = @transform_2, window_bounds = array<i64: 3, 128, 128>}, {pipeline_mode = #tpu.pipeline_mode<synchronous>, transform_indices = @transform_3, window_bounds = array<i64: 4, 1, 128>}, {transform_indices = @transform_4, window_bounds = array<i64: 8, 128>}]} {
    %c0 = arith.constant 0 : index
    %c0_0 = arith.constant 0 : index
    %0 = vector.load %arg1[%c0, %c0_0] : memref<8x1024xf32, #tpu.memory_space<vmem>>, vector<8x1024xf32>
    %c0_1 = arith.constant 0 : index
    %c0_2 = arith.constant 0 : index
    %1 = vector.load %arg2[%c0_1, %c0_2] : memref<1024x128xf32, #tpu.memory_space<vmem>>, vector<1024x128xf32>
    %cst = arith.constant dense<0.000000e+00> : vector<8x128xf32>
    %2 = tpu.matmul %0, %1, %cst {dimension_numbers = #tpu.dot_dimension_numbers<[1], [0], [0], [1], [0, 0, 1, 1], [], []>} : vector<8x1024xf32>, vector<1024x128xf32>, vector<8x128xf32> -> vector<8x128xf32>
    %c0_3 = arith.constant 0 : index
    %c0_4 = arith.constant 0 : index
    %c0_5 = arith.constant 0 : index
    %3 = vector.load %arg4[%c0_3, %c0_4, %c0_5] : memref<4x1x128xf32, #tpu.memory_space<vmem>>, vector<1x1x128xf32>
    %4 = vector.shape_cast %3 : vector<1x1x128xf32> to vector<1x128xf32>
    %5 = vector.broadcast %4 : vector<1x128xf32> to vector<8x128xf32>
    %6 = arith.addf %2, %5 : vector<8x128xf32>
    %cst_6 = arith.constant 0.000000e+00 : f32
    %7 = vector.broadcast %cst_6 : f32 to vector<8x128xf32>
    %8 = arith.maximumf %6, %7 : vector<8x128xf32>
    %c0_7 = arith.constant 0 : index
    %c0_8 = arith.constant 0 : index
    %c0_9 = arith.constant 0 : index
    %9 = vector.load %arg3[%c0_7, %c0_8, %c0_9] : memref<3x128x128xf32, #tpu.memory_space<vmem>>, vector<1x128x128xf32>
    %10 = vector.shape_cast %9 : vector<1x128x128xf32> to vector<128x128xf32>
    %cst_10 = arith.constant dense<0.000000e+00> : vector<8x128xf32>
    %11 = tpu.matmul %8, %10, %cst_10 {dimension_numbers = #tpu.dot_dimension_numbers<[1], [0], [0], [1], [0, 0, 1, 1], [], []>} : vector<8x128xf32>, vector<128x128xf32>, vector<8x128xf32> -> vector<8x128xf32>
    %c1 = arith.constant 1 : index
    %c0_11 = arith.constant 0 : index
    %c0_12 = arith.constant 0 : index
    %12 = vector.load %arg4[%c1, %c0_11, %c0_12] : memref<4x1x128xf32, #tpu.memory_space<vmem>>, vector<1x1x128xf32>
    %13 = vector.shape_cast %12 : vector<1x1x128xf32> to vector<1x128xf32>
    %14 = vector.broadcast %13 : vector<1x128xf32> to vector<8x128xf32>
    %15 = arith.addf %11, %14 : vector<8x128xf32>
    %cst_13 = arith.constant 0.000000e+00 : f32
    %16 = vector.broadcast %cst_13 : f32 to vector<8x128xf32>
    %17 = arith.maximumf %15, %16 : vector<8x128xf32>
    %c1_14 = arith.constant 1 : index
    %c0_15 = arith.constant 0 : index
    %c0_16 = arith.constant 0 : index
    %18 = vector.load %arg3[%c1_14, %c0_15, %c0_16] : memref<3x128x128xf32, #tpu.memory_space<vmem>>, vector<1x128x128xf32>
    %19 = vector.shape_cast %18 : vector<1x128x128xf32> to vector<128x128xf32>
    %cst_17 = arith.constant dense<0.000000e+00> : vector<8x128xf32>
    %20 = tpu.matmul %17, %19, %cst_17 {dimension_numbers = #tpu.dot_dimension_numbers<[1], [0], [0], [1], [0, 0, 1, 1], [], []>} : vector<8x128xf32>, vector<128x128xf32>, vector<8x128xf32> -> vector<8x128xf32>
    %c2 = arith.constant 2 : index
    %c0_18 = arith.constant 0 : index
    %c0_19 = arith.constant 0 : index
    %21 = vector.load %arg4[%c2, %c0_18, %c0_19] : memref<4x1x128xf32, #tpu.memory_space<vmem>>, vector<1x1x128xf32>
    %22 = vector.shape_cast %21 : vector<1x1x128xf32> to vector<1x128xf32>
    %23 = vector.broadcast %22 : vector<1x128xf32> to vector<8x128xf32>
    %24 = arith.addf %20, %23 : vector<8x128xf32>
    %cst_20 = arith.constant 0.000000e+00 : f32
    %25 = vector.broadcast %cst_20 : f32 to vector<8x128xf32>
    %26 = arith.maximumf %24, %25 : vector<8x128xf32>
    %c2_21 = arith.constant 2 : index
    %c0_22 = arith.constant 0 : index
    %c0_23 = arith.constant 0 : index
    %27 = vector.load %arg3[%c2_21, %c0_22, %c0_23] : memref<3x128x128xf32, #tpu.memory_space<vmem>>, vector<1x128x128xf32>
    %28 = vector.shape_cast %27 : vector<1x128x128xf32> to vector<128x128xf32>
    %cst_24 = arith.constant dense<0.000000e+00> : vector<8x128xf32>
    %29 = tpu.matmul %26, %28, %cst_24 {dimension_numbers = #tpu.dot_dimension_numbers<[1], [0], [0], [1], [0, 0, 1, 1], [], []>} : vector<8x128xf32>, vector<128x128xf32>, vector<8x128xf32> -> vector<8x128xf32>
    %c3 = arith.constant 3 : index
    %c0_25 = arith.constant 0 : index
    %c0_26 = arith.constant 0 : index
    %30 = vector.load %arg4[%c3, %c0_25, %c0_26] : memref<4x1x128xf32, #tpu.memory_space<vmem>>, vector<1x1x128xf32>
    %31 = vector.shape_cast %30 : vector<1x1x128xf32> to vector<1x128xf32>
    %32 = vector.broadcast %31 : vector<1x128xf32> to vector<8x128xf32>
    %33 = arith.addf %29, %32 : vector<8x128xf32>
    %c0_27 = arith.constant 0 : index
    %c0_28 = arith.constant 0 : index
    %34 = vector.load %arg5[%c0_27, %c0_28] : memref<8x128xf32, #tpu.memory_space<vmem>>, vector<8x128xf32>
    tpu.vector_store %arg5[%c0_27, %c0_28], %33 {strides = array<i32>} : memref<8x128xf32, #tpu.memory_space<vmem>>, vector<8x128xf32>,
    return
  }
  func.func @transform_0(%arg0: i32) -> (i32, i32) {
    %c0_i32 = arith.constant 0 : i32
    %c0_i32_0 = arith.constant 0 : i32
    return %arg0, %c0_i32 : i32, i32
  }
  func.func @transform_1(%arg0: i32) -> (i32, i32) {
    %c0_i32 = arith.constant 0 : i32
    %c0_i32_0 = arith.constant 0 : i32
    %c0_i32_1 = arith.constant 0 : i32
    return %c0_i32, %c0_i32_0 : i32, i32
  }
  func.func @transform_2(%arg0: i32) -> (i32, i32, i32) {
    %c0_i32 = arith.constant 0 : i32
    %c0_i32_0 = arith.constant 0 : i32
    %c0_i32_1 = arith.constant 0 : i32
    %c0_i32_2 = arith.constant 0 : i32
    return %c0_i32, %c0_i32_0, %c0_i32_1 : i32, i32, i32
  }
  func.func @transform_3(%arg0: i32) -> (i32, i32, i32) {
    %c0_i32 = arith.constant 0 : i32
    %c0_i32_0 = arith.constant 0 : i32
    %c0_i32_1 = arith.constant 0 : i32
    %c0_i32_2 = arith.constant 0 : i32
    return %c0_i32, %c0_i32_0, %c0_i32_1 : i32, i32, i32
  }
  func.func @transform_4(%arg0: i32) -> (i32, i32) {
    %c0_i32 = arith.constant 0 : i32
    %c0_i32_0 = arith.constant 0 : i32
    return %arg0, %c0_i32 : i32, i32
  }
}

</mosaic_0001>

<bundles_post_ra>
// kernel: tpu_custom_call.1
= control target key start
LH: loop header
LB: loop body
LE: loop exit
PB: predicated region body
PF: predicated region fallthrough
CT: control target
= control target key end

     0   :  { %9 = vsyncpa [#allocation3], 0  ;;  %s717_s0 = inlined_call_operand.hbm [shape: f32[8,1024], index: 0, kind: input, shape index: {}]   ;;  %s718_s1 = inlined_call_operand.hbm [shape: f32[1024,128], index: 1, kind: input, shape index: {}]   ;;  %s719_s2 = inlined_call_operand.hbm [shape: f32[3,128,128], index: 2, kind: input, shape index: {}]   ;;  %s720_s3 = inlined_call_operand.hbm [shape: f32[4,1,128], index: 3, kind: input, shape index: {}]   ;;  %s721_s4 = inlined_call_operand.hbm [shape: f32[8,128], index: 4, kind: output, shape index: {}]  }
   0x1   :  { %10 = vsyncpa [#allocation6], 0 }
   0x2   :  { %11 = vsyncpa [#allocation9], 0  ;;  %s28_s17 = sshll.u32 %s718_s1, 4  ;;  %s29_s17 = int_to_ptr.hbm [resolvable:$true] %s28_s17 }
   0x3   :  { %12 = vsyncpa [#allocation4], 0  ;;  %s668_s18 = smov [#allocation5]   ;;  %s18_s22 = sshll.u32 %s717_s0, 4  ;;  %s19_s22 = int_to_ptr.hbm [resolvable:$true] %s18_s22 }
   0x4   :  { %s30_s19 = sshll.u32 %s668_s18, 4  ;;  %s669_s23 = smov 128   ;;  %s31_s19 = int_to_ptr.vmem [resolvable:$true] %s30_s19 }
   0x5   :  { %s670_s24 = smov 8   ;;  %s671_s25 = smov [#allocation2]  }
   0x6   :  { %36 = dma.hbm_to_vmem [thread:$0]  %s29_s17, 16384, %s31_s19, [#allocation6], %s669_s23, %s669_s23, %s670_s24  }
   0x7   :  { %s20_s26 = sshll.u32 %s671_s25, 4  ;;  %s41_s29 = sshll.u32 %s719_s2, 4  ;;  %s21_s26 = int_to_ptr.vmem [resolvable:$true] %s20_s26  ;;  %s42_s29 = int_to_ptr.hbm [resolvable:$true] %s41_s29 }
   0x8   :  { %23 = dma.hbm_to_vmem [thread:$0]  %s19_s22, 1024, %s21_s26, [#allocation3]  }
   0x9   :  { %s54_s5 = sshll.u32 %s720_s3, 4  ;;  %s672_s6 = smov [#allocation7]   ;;  %s55_s5 = int_to_ptr.hbm [resolvable:$true] %s54_s5 }
   0xa   :  { %s43_s7 = sshll.u32 %s672_s6, 4  ;;  %s673_s0 = smov [#allocation8]   ;;  %s44_s7 = int_to_ptr.vmem [resolvable:$true] %s43_s7 }
   0xb   :  { %49 = dma.hbm_to_vmem [thread:$0]  %s42_s29, 6144, %s44_s7, [#allocation6], %s669_s23, %s669_s23, %s670_s24  }
   0xc   :  { %s56_s8 = sshll.u32 %s673_s0, 4  ;;  %s674_s9 = smov 16   ;;  %s57_s8 = int_to_ptr.vmem [resolvable:$true] %s56_s8 }
   0xd   :  { %s675_s10 = smov 1  }
   0xe   :  { %62 = dma.hbm_to_vmem [thread:$0]  %s55_s5, 64, %s57_s8, [#allocation9], %s674_s9, %s674_s9, %s675_s10  }
   0xf   :  { %660 = dma.done.wait [#allocation3], 1024  }
  0x10   :  { %661 = vsyncadd [#allocation3], 4294966272 }
  0x11   :  { %662 = dma.done.wait [#allocation6], 22528  }
  0x12   :  { %663 = vsyncadd [#allocation6], 4294944768 }
  0x13   :  { %664 = dma.done.wait [#allocation9], 64  }
  0x14   :  { %665 = vsyncadd [#allocation9], 4294967232  ;;  %v134_v0 = vld [vmem:[#allocation5 + $0x178] sm:$0xff]  ;;  %v133_v2 = vld [vmem:[#allocation5 + $0x170] sm:$0xff]  ;;  %s676_s2 = smov [#allocation10]   ;;  %s515_s13 = sshll.u32 %s721_s4, 4  ;;  %s516_s13 = int_to_ptr.hbm [resolvable:$true] %s515_s13 }
  0x15   :  { %v102_v1 = vld [vmem:[#allocation5 + $0x78] sm:$0xff]  ;;  %259 = vmatpush.msra.mxu2 %v134_v0  ;;  %v101_v4 = vld [vmem:[#allocation5 + $0x70] sm:$0xff]  ;;  %v132_v6 = vld [vmem:[#allocation5 + $0x168] sm:$0xff]  ;;  %s513_s3 = sshll.u32 %s676_s2, 4  ;;  %s514_s3 = int_to_ptr.vmem [resolvable:$true] %s513_s3 }
  0x16   :  { %219 = vmatpush.msra.mxu0 %v102_v1  ;;  %v150_v3 = vld [vmem:[#allocation5 + $0x1f8] sm:$0xff]  ;;  %v149_v7 = vld [vmem:[#allocation5 + $0x1f0] sm:$0xff]  ;;  %v100_v8 = vld [vmem:[#allocation5 + $0x68] sm:$0xff] }
  0x17   :  { %v118_v5 = vld [vmem:[#allocation5 + $0xf8] sm:$0xff]  ;;  %279 = vmatpush.msra.mxu3 %v150_v3  ;;  %260 = vmatpush.msra.mxu2 %v133_v2  ;;  %v117_v9 = vld [vmem:[#allocation5 + $0xf0] sm:$0xff]  ;;  %v148_v10 = vld [vmem:[#allocation5 + $0x1e8] sm:$0xff] }
  0x18   :  { %239 = vmatpush.msra.mxu1 %v118_v5  ;;  %220 = vmatpush.msra.mxu0 %v101_v4  ;;  %v131_v11 = vld [vmem:[#allocation5 + $0x160] sm:$0xff]  ;;  %v116_v13 = vld [vmem:[#allocation5 + $0xe8] sm:$0xff]  ;;  %v130_v16 = vld [vmem:[#allocation5 + $0x158] sm:$0xff] }
  0x19   :  { %280 = vmatpush.msra.mxu3 %v149_v7  ;;  %v99_v12 = vld [vmem:[#allocation5 + $0x60] sm:$0xff]  ;;  %261 = vmatpush.msra.mxu2 %v132_v6  ;;  %v98_v17 = vld [vmem:[#allocation5 + $0x58] sm:$0xff]  ;;  %v129_v20 = vld [vmem:[#allocation5 + $0x150] sm:$0xff] }
  0x1a   :  { %240 = vmatpush.msra.mxu1 %v117_v9  ;;  %221 = vmatpush.msra.mxu0 %v100_v8  ;;  %v147_v14 = vld [vmem:[#allocation5 + $0x1e0] sm:$0xff]  ;;  %v146_v18 = vld [vmem:[#allocation5 + $0x1d8] sm:$0xff]  ;;  %v97_v21 = vld [vmem:[#allocation5 + $0x50] sm:$0xff] }
  0x1b   :  { %v115_v15 = vld [vmem:[#allocation5 + $0xe0] sm:$0xff]  ;;  %281 = vmatpush.msra.mxu3 %v148_v10  ;;  %262 = vmatpush.msra.mxu2 %v131_v11  ;;  %v114_v19 = vld [vmem:[#allocation5 + $0xd8] sm:$0xff]  ;;  %v145_v22 = vld [vmem:[#allocation5 + $0x1d0] sm:$0xff] }
  0x1c   :  { %241 = vmatpush.msra.mxu1 %v116_v13  ;;  %222 = vmatpush.msra.mxu0 %v99_v12  ;;  %v113_v23 = vld [vmem:[#allocation5 + $0xd0] sm:$0xff]  ;;  %v128_v24 = vld [vmem:[#allocation5 + $0x148] sm:$0xff]  ;;  %v127_v28 = vld [vmem:[#allocation5 + $0x140] sm:$0xff] }
  0x1d   :  { %282 = vmatpush.msra.mxu3 %v147_v14  ;;  %263 = vmatpush.msra.mxu2 %v130_v16  ;;  %v96_v25 = vld [vmem:[#allocation5 + $0x48] sm:$0xff]  ;;  %v95_v29 = vld [vmem:[#allocation5 + $0x40] sm:$0xff]  ;;  %v126_v32 = vld [vmem:[#allocation5 + $0x138] sm:$0xff] }
  0x1e   :  { %242 = vmatpush.msra.mxu1 %v115_v15  ;;  %223 = vmatpush.msra.mxu0 %v98_v17  ;;  %v144_v26 = vld [vmem:[#allocation5 + $0x1c8] sm:$0xff]  ;;  %v143_v30 = vld [vmem:[#allocation5 + $0x1c0] sm:$0xff]  ;;  %v94_v33 = vld [vmem:[#allocation5 + $0x38] sm:$0xff] }
  0x1f   :  { %283 = vmatpush.msra.mxu3 %v146_v18  ;;  %264 = vmatpush.msra.mxu2 %v129_v20  ;;  %v112_v27 = vld [vmem:[#allocation5 + $0xc8] sm:$0xff]  ;;  %v111_v31 = vld [vmem:[#allocation5 + $0xc0] sm:$0xff]  ;;  %v142_v34 = vld [vmem:[#allocation5 + $0x1b8] sm:$0xff] }
  0x20   :  { %243 = vmatpush.msra.mxu1 %v114_v19  ;;  %224 = vmatpush.msra.mxu0 %v97_v21  ;;  %v110_v35 = vld [vmem:[#allocation5 + $0xb8] sm:$0xff]  ;;  %v125_v36 = vld [vmem:[#allocation5 + $0x130] sm:$0xff]  ;;  %v124_v40 = vld [vmem:[#allocation5 + $0x128] sm:$0xff] }
  0x21   :  { %284 = vmatpush.msra.mxu3 %v145_v22  ;;  %265 = vmatpush.msra.mxu2 %v128_v24  ;;  %v93_v37 = vld [vmem:[#allocation5 + $0x30] sm:$0xff]  ;;  %v92_v41 = vld [vmem:[#allocation5 + $0x28] sm:$0xff]  ;;  %v123_v44 = vld [vmem:[#allocation5 + $0x120] sm:$0xff] }
  0x22   :  { %244 = vmatpush.msra.mxu1 %v113_v23  ;;  %225 = vmatpush.msra.mxu0 %v96_v25  ;;  %v141_v38 = vld [vmem:[#allocation5 + $0x1b0] sm:$0xff]  ;;  %v140_v42 = vld [vmem:[#allocation5 + $0x1a8] sm:$0xff]  ;;  %v91_v45 = vld [vmem:[#allocation5 + $0x20] sm:$0xff] }
  0x23   :  { %285 = vmatpush.msra.mxu3 %v144_v26  ;;  %266 = vmatpush.msra.mxu2 %v127_v28  ;;  %v109_v39 = vld [vmem:[#allocation5 + $0xb0] sm:$0xff]  ;;  %v108_v43 = vld [vmem:[#allocation5 + $0xa8] sm:$0xff]  ;;  %v139_v46 = vld [vmem:[#allocation5 + $0x1a0] sm:$0xff] }
  0x24   :  { %245 = vmatpush.msra.mxu1 %v112_v27  ;;  %226 = vmatpush.msra.mxu0 %v95_v29  ;;  %v107_v47 = vld [vmem:[#allocation5 + $0xa0] sm:$0xff]  ;;  %v122_v48 = vld [vmem:[#allocation5 + $0x118] sm:$0xff]  ;;  %v121_v52 = vld [vmem:[#allocation5 + $0x110] sm:$0xff] }
  0x25   :  { %286 = vmatpush.msra.mxu3 %v143_v30  ;;  %267 = vmatpush.msra.mxu2 %v126_v32  ;;  %v90_v49 = vld [vmem:[#allocation5 + $0x18] sm:$0xff]  ;;  %v89_v53 = vld [vmem:[#allocation5 + $0x10] sm:$0xff]  ;;  %v120_v56 = vld [vmem:[#allocation5 + $0x108] sm:$0xff] }
  0x26   :  { %246 = vmatpush.msra.mxu1 %v111_v31  ;;  %227 = vmatpush.msra.mxu0 %v94_v33  ;;  %v138_v50 = vld [vmem:[#allocation5 + $0x198] sm:$0xff]  ;;  %v137_v54 = vld [vmem:[#allocation5 + $0x190] sm:$0xff]  ;;  %v88_v57 = vld [vmem:[#allocation5 + $0x8] sm:$0xff] }
  0x27   :  { %287 = vmatpush.msra.mxu3 %v142_v34  ;;  %268 = vmatpush.msra.mxu2 %v125_v36  ;;  %v106_v51 = vld [vmem:[#allocation5 + $0x98] sm:$0xff]  ;;  %v105_v55 = vld [vmem:[#allocation5 + $0x90] sm:$0xff]  ;;  %v136_v58 = vld [vmem:[#allocation5 + $0x188] sm:$0xff] }
  0x28   :  { %247 = vmatpush.msra.mxu1 %v110_v35  ;;  %228 = vmatpush.msra.mxu0 %v93_v37  ;;  %v104_v59 = vld [vmem:[#allocation5 + $0x88] sm:$0xff]  ;;  %v119_v60 = vld [vmem:[#allocation5 + $0x100] sm:$0xff]  ;;  %v198_v62 = vld [vmem:[#allocation5 + $0x378] sm:$0xff] }
  0x29   :  { %288 = vmatpush.msra.mxu3 %v141_v38  ;;  %269 = vmatpush.msra.mxu2 %v124_v40  ;;  %v87_v61 = vld [vmem:[#allocation5] sm:$0xff]  ;;  %v166_v0 = vld [vmem:[#allocation5 + $0x278] sm:$0xff]  ;;  %v197_v2 = vld [vmem:[#allocation5 + $0x370] sm:$0xff] }
  0x2a   :  { %248 = vmatpush.msra.mxu1 %v109_v39  ;;  %229 = vmatpush.msra.mxu0 %v92_v41  ;;  %v135_v63 = vld [vmem:[#allocation5 + $0x180] sm:$0xff]  ;;  %v214_v1 = vld [vmem:[#allocation5 + $0x3f8] sm:$0xff]  ;;  %v165_v4 = vld [vmem:[#allocation5 + $0x270] sm:$0xff] }
  0x2b   :  { %289 = vmatpush.msra.mxu3 %v140_v42  ;;  %270 = vmatpush.msra.mxu2 %v123_v44  ;;  %v103_v3 = vld [vmem:[#allocation5 + $0x80] sm:$0xff]  ;;  %v182_v5 = vld [vmem:[#allocation5 + $0x2f8] sm:$0xff]  ;;  %v196_v6 = vld [vmem:[#allocation5 + $0x368] sm:$0xff] }
  0x2c   :  { %249 = vmatpush.msra.mxu1 %v108_v43  ;;  %230 = vmatpush.msra.mxu0 %v91_v45  ;;  %v213_v7 = vld [vmem:[#allocation5 + $0x3f0] sm:$0xff]  ;;  %v164_v8 = vld [vmem:[#allocation5 + $0x268] sm:$0xff]  ;;  %v195_v10 = vld [vmem:[#allocation5 + $0x360] sm:$0xff] }
  0x2d   :  { %290 = vmatpush.msra.mxu3 %v139_v46  ;;  %271 = vmatpush.msra.mxu2 %v122_v48  ;;  %v181_v9 = vld [vmem:[#allocation5 + $0x2f0] sm:$0xff]  ;;  %v212_v11 = vld [vmem:[#allocation5 + $0x3e8] sm:$0xff]  ;;  %v163_v12 = vld [vmem:[#allocation5 + $0x260] sm:$0xff] }
  0x2e   :  { %250 = vmatpush.msra.mxu1 %v107_v47  ;;  %231 = vmatpush.msra.mxu0 %v90_v49  ;;  %v180_v13 = vld [vmem:[#allocation5 + $0x2e8] sm:$0xff]  ;;  %v194_v14 = vld [vmem:[#allocation5 + $0x358] sm:$0xff]  ;;  %v211_v15 = vld [vmem:[#allocation5 + $0x3e0] sm:$0xff] }
  0x2f   :  { %291 = vmatpush.msra.mxu3 %v138_v50  ;;  %272 = vmatpush.msra.mxu2 %v121_v52  ;;  %v162_v16 = vld [vmem:[#allocation5 + $0x258] sm:$0xff]  ;;  %v179_v17 = vld [vmem:[#allocation5 + $0x2e0] sm:$0xff]  ;;  %v193_v18 = vld [vmem:[#allocation5 + $0x350] sm:$0xff] }
  0x30   :  { %251 = vmatpush.msra.mxu1 %v106_v51  ;;  %232 = vmatpush.msra.mxu0 %v89_v53  ;;  %v210_v19 = vld [vmem:[#allocation5 + $0x3d8] sm:$0xff]  ;;  %v161_v20 = vld [vmem:[#allocation5 + $0x250] sm:$0xff]  ;;  %v192_v22 = vld [vmem:[#allocation5 + $0x348] sm:$0xff] }
  0x31   :  { %292 = vmatpush.msra.mxu3 %v137_v54  ;;  %273 = vmatpush.msra.mxu2 %v120_v56  ;;  %v178_v21 = vld [vmem:[#allocation5 + $0x2d8] sm:$0xff]  ;;  %v209_v23 = vld [vmem:[#allocation5 + $0x3d0] sm:$0xff]  ;;  %v160_v24 = vld [vmem:[#allocation5 + $0x248] sm:$0xff] }
  0x32   :  { %252 = vmatpush.msra.mxu1 %v105_v55  ;;  %233 = vmatpush.msra.mxu0 %v88_v57  ;;  %v177_v25 = vld [vmem:[#allocation5 + $0x2d0] sm:$0xff]  ;;  %v191_v26 = vld [vmem:[#allocation5 + $0x340] sm:$0xff]  ;;  %v208_v27 = vld [vmem:[#allocation5 + $0x3c8] sm:$0xff] }
  0x33   :  { %293 = vmatpush.msra.mxu3 %v136_v58  ;;  %274 = vmatpush.msra.mxu2 %v119_v60  ;;  %v159_v28 = vld [vmem:[#allocation5 + $0x240] sm:$0xff]  ;;  %v176_v29 = vld [vmem:[#allocation5 + $0x2c8] sm:$0xff]  ;;  %v190_v30 = vld [vmem:[#allocation5 + $0x338] sm:$0xff] }
  0x34   :  { %253 = vmatpush.msra.mxu1 %v104_v59  ;;  %234 = vmatpush.msra.mxu0 %v87_v61  ;;  %v207_v31 = vld [vmem:[#allocation5 + $0x3c0] sm:$0xff]  ;;  %v158_v32 = vld [vmem:[#allocation5 + $0x238] sm:$0xff]  ;;  %v189_v34 = vld [vmem:[#allocation5 + $0x330] sm:$0xff] }
  0x35   :  { %339 = vmatpush.msrb.mxu2 %v198_v62  ;;  %294 = vmatpush.msra.mxu3 %v135_v63  ;;  %v175_v33 = vld [vmem:[#allocation5 + $0x2c0] sm:$0xff]  ;;  %v206_v35 = vld [vmem:[#allocation5 + $0x3b8] sm:$0xff]  ;;  %v157_v36 = vld [vmem:[#allocation5 + $0x230] sm:$0xff] }
  0x36   :  { %299 = vmatpush.msrb.mxu0 %v166_v0  ;;  %254 = vmatpush.msra.mxu1 %v103_v3  ;;  %v174_v37 = vld [vmem:[#allocation5 + $0x2b8] sm:$0xff]  ;;  %v188_v38 = vld [vmem:[#allocation5 + $0x328] sm:$0xff]  ;;  %v205_v39 = vld [vmem:[#allocation5 + $0x3b0] sm:$0xff] }
  0x37   :  { %359 = vmatpush.msrb.mxu3 %v214_v1  ;;  %340 = vmatpush.msrb.mxu2 %v197_v2  ;;  %v156_v40 = vld [vmem:[#allocation5 + $0x228] sm:$0xff]  ;;  %v173_v41 = vld [vmem:[#allocation5 + $0x2b0] sm:$0xff]  ;;  %v187_v42 = vld [vmem:[#allocation5 + $0x320] sm:$0xff] }
  0x38   :  { %300 = vmatpush.msrb.mxu0 %v165_v4  ;;  %319 = vmatpush.msrb.mxu1 %v182_v5  ;;  %v204_v43 = vld [vmem:[#allocation5 + $0x3a8] sm:$0xff]  ;;  %v81_v44 = vld [vmem:[#allocation2 + $0x10] sm:$0xff]  ;;  %v155_v45 = vld [vmem:[#allocation5 + $0x220] sm:$0xff] }
  0x39   :  { %341 = vmatpush.msrb.mxu2 %v196_v6  ;;  %360 = vmatpush.msrb.mxu3 %v213_v7  ;;  %v172_v46 = vld [vmem:[#allocation5 + $0x2a8] sm:$0xff]  ;;  %v186_v47 = vld [vmem:[#allocation5 + $0x318] sm:$0xff]  ;;  %v203_v48 = vld [vmem:[#allocation5 + $0x3a0] sm:$0xff] }
  0x3a   :  { %301 = vmatpush.msrb.mxu0 %v164_v8  ;;  %320 = vmatpush.msrb.mxu1 %v181_v9  ;;  %v79_v49 = vld [vmem:[#allocation2] sm:$0xff]  ;;  %v82_v50 = vld [vmem:[#allocation2 + $0x18] sm:$0xff]  ;;  %v185_v53 = vld [vmem:[#allocation5 + $0x310] sm:$0xff] }
  0x3b   :  { %342 = vmatpush.msrb.mxu2 %v195_v10  ;;  %361 = vmatpush.msrb.mxu3 %v212_v11  ;;  %v154_v51 = vld [vmem:[#allocation5 + $0x218] sm:$0xff]  ;;  %v171_v52 = vld [vmem:[#allocation5 + $0x2a0] sm:$0xff]  ;;  %v80_v55 = vld [vmem:[#allocation2 + $0x8] sm:$0xff] }
  0x3c   :  { %302 = vmatpush.msrb.mxu0 %v163_v12  ;;  %321 = vmatpush.msrb.mxu1 %v180_v13  ;;  %v202_v54 = vld [vmem:[#allocation5 + $0x398] sm:$0xff]  ;;  %v153_v56 = vld [vmem:[#allocation5 + $0x210] sm:$0xff]  ;;  %v184_v58 = vld [vmem:[#allocation5 + $0x308] sm:$0xff] }
  0x3d   :  { %343 = vmatpush.msrb.mxu2 %v194_v14  ;;  %362 = vmatpush.msrb.mxu3 %v211_v15  ;;  %v170_v57 = vld [vmem:[#allocation5 + $0x298] sm:$0xff]  ;;  %v201_v59 = vld [vmem:[#allocation5 + $0x390] sm:$0xff]  ;;  %v152_v60 = vld [vmem:[#allocation5 + $0x208] sm:$0xff] }
  0x3e   :  { %303 = vmatpush.msrb.mxu0 %v162_v16  ;;  %322 = vmatpush.msrb.mxu1 %v179_v17  ;;  %v169_v61 = vld [vmem:[#allocation5 + $0x290] sm:$0xff]  ;;  %v183_v62 = vld [vmem:[#allocation5 + $0x300] sm:$0xff]  ;;  %v200_v63 = vld [vmem:[#allocation5 + $0x388] sm:$0xff] }
  0x3f   :  { %344 = vmatpush.msrb.mxu2 %v193_v18  ;;  %363 = vmatpush.msrb.mxu3 %v210_v19  ;;  %v85_v0 = vld [vmem:[#allocation2 + $0x30] sm:$0xff]  ;;  %v151_v1 = vld [vmem:[#allocation5 + $0x200] sm:$0xff]  ;;  %v168_v2 = vld [vmem:[#allocation5 + $0x288] sm:$0xff] }
  0x40   :  { %304 = vmatpush.msrb.mxu0 %v161_v20  ;;  %323 = vmatpush.msrb.mxu1 %v178_v21  ;;  %v199_v3 = vld [vmem:[#allocation5 + $0x380] sm:$0xff]  ;;  %v86_v5 = vld [vmem:[#allocation2 + $0x38] sm:$0xff]  ;;  %v84_v8 = vld [vmem:[#allocation2 + $0x28] sm:$0xff] }
  0x41   :  { %345 = vmatpush.msrb.mxu2 %v192_v22  ;;  %364 = vmatpush.msrb.mxu3 %v209_v23  ;;  %v83_v4 = vld [vmem:[#allocation2 + $0x20] sm:$0xff]  ;;  %v395_v7 = vld [vmem:[#allocation7 + $0x78] sm:$0xff]  ;;  %v394_v9 = vld [vmem:[#allocation7 + $0x70] sm:$0xff] }
  0x42   :  { %305 = vmatpush.msrb.mxu0 %v160_v24  ;;  %324 = vmatpush.msrb.mxu1 %v177_v25  ;;  %v167_v6 = vld [vmem:[#allocation5 + $0x280] sm:$0xff]  ;;  %v393_v10 = vld [vmem:[#allocation7 + $0x68] sm:$0xff]  ;;  %v391_v12 = vld [vmem:[#allocation7 + $0x58] sm:$0xff] }
  0x43   :  { %346 = vmatpush.msrb.mxu2 %v191_v26  ;;  %365 = vmatpush.msrb.mxu3 %v208_v27  ;;  %v392_v11 = vld [vmem:[#allocation7 + $0x60] sm:$0xff]  ;;  %v390_v13 = vld [vmem:[#allocation7 + $0x50] sm:$0xff]  ;;  %v389_v14 = vld [vmem:[#allocation7 + $0x48] sm:$0xff] }
  0x44   :  { %306 = vmatpush.msrb.mxu0 %v159_v28  ;;  %325 = vmatpush.msrb.mxu1 %v176_v29  ;;  %v388_v15 = vld [vmem:[#allocation7 + $0x40] sm:$0xff]  ;;  %v387_v16 = vld [vmem:[#allocation7 + $0x38] sm:$0xff]  ;;  %v386_v17 = vld [vmem:[#allocation7 + $0x30] sm:$0xff] }
  0x45   :  { %347 = vmatpush.msrb.mxu2 %v190_v30  ;;  %366 = vmatpush.msrb.mxu3 %v207_v31  ;;  %v385_v18 = vld [vmem:[#allocation7 + $0x28] sm:$0xff]  ;;  %v384_v19 = vld [vmem:[#allocation7 + $0x20] sm:$0xff]  ;;  %v383_v20 = vld [vmem:[#allocation7 + $0x18] sm:$0xff] }
  0x46   :  { %307 = vmatpush.msrb.mxu0 %v158_v32  ;;  %326 = vmatpush.msrb.mxu1 %v175_v33  ;;  %v382_v21 = vld [vmem:[#allocation7 + $0x10] sm:$0xff]  ;;  %v381_v22 = vld [vmem:[#allocation7 + $0x8] sm:$0xff]  ;;  %v380_v23 = vld [vmem:[#allocation7] sm:$0xff] }
  0x47   :  { %348 = vmatpush.msrb.mxu2 %v189_v34  ;;  %367 = vmatpush.msrb.mxu3 %v206_v35  ;;  %v438_v24 = vld [vmem:[#allocation7 + $0xf8] sm:$0xff]  ;;  %v437_v25 = vld [vmem:[#allocation7 + $0xf0] sm:$0xff]  ;;  %v436_v26 = vld [vmem:[#allocation7 + $0xe8] sm:$0xff] }
  0x48   :  { %308 = vmatpush.msrb.mxu0 %v157_v36  ;;  %327 = vmatpush.msrb.mxu1 %v174_v37  ;;  %v435_v27 = vld [vmem:[#allocation7 + $0xe0] sm:$0xff]  ;;  %v434_v28 = vld [vmem:[#allocation7 + $0xd8] sm:$0xff]  ;;  %v433_v30 = vld [vmem:[#allocation7 + $0xd0] sm:$0xff] }
  0x49   :  { %349 = vmatpush.msrb.mxu2 %v188_v38  ;;  %368 = vmatpush.msrb.mxu3 %v205_v39  ;;  %v536_v29 = vld [vmem:[#allocation8] ss:$0 sm:$0xff]  ;;  %v432_v31 = vld [vmem:[#allocation7 + $0xc8] sm:$0xff]  ;;  %v430_v36 = vld [vmem:[#allocation7 + $0xb8] sm:$0xff] }
  0x4a   :  { %309 = vmatpush.msrb.mxu0 %v156_v40  ;;  %328 = vmatpush.msrb.mxu1 %v173_v41  ;;  %v431_v34 = vld [vmem:[#allocation7 + $0xc0] sm:$0xff]  ;;  %v429_v39 = vld [vmem:[#allocation7 + $0xb0] sm:$0xff] }
  0x4b   :  { %350 = vmatpush.msrb.mxu2 %v187_v42  ;;  %369 = vmatpush.msrb.mxu3 %v204_v43  ;;  %v428_v42 = vld [vmem:[#allocation7 + $0xa8] sm:$0xff] }
  0x4c   :  { %275 = vmatmul.f32.vlgmr.msra.gmra.mxu2 %v81_v44  ;;  %310 = vmatpush.msrb.mxu0 %v155_v45  ;;  %v427_v44 = vld [vmem:[#allocation7 + $0xa0] sm:$0xff] }
  0x4d   :  { %329 = vmatpush.msrb.mxu1 %v172_v46  ;;  %351 = vmatpush.msrb.mxu2 %v186_v47  ;;  %v426_v47 = vld [vmem:[#allocation7 + $0x98] sm:$0xff] }
  0x4e   :  { %370 = vmatpush.msrb.mxu3 %v203_v48  ;;  %235 = vmatmul.f32.vlgmr.msra.gmra.mxu0 %v79_v49 }
  0x4f   :  { %295 = vmatmul.f32.vlgmr.msra.gmra.mxu3 %v82_v50  ;;  %311 = vmatpush.msrb.mxu0 %v154_v51 }
  0x50   :  { %330 = vmatpush.msrb.mxu1 %v171_v52  ;;  %352 = vmatpush.msrb.mxu2 %v185_v53 }
  0x51   :  { %371 = vmatpush.msrb.mxu3 %v202_v54  ;;  %255 = vmatmul.f32.vlgmr.msra.gmra.mxu1 %v80_v55  ;;  %v425_v55 = vld [vmem:[#allocation7 + $0x90] sm:$0xff] }
  0x52   :  { %312 = vmatpush.msrb.mxu0 %v153_v56  ;;  %331 = vmatpush.msrb.mxu1 %v170_v57  ;;  %v424_v56 = vld [vmem:[#allocation7 + $0x88] sm:$0xff]  ;;  %v423_v57 = vld [vmem:[#allocation7 + $0x80] sm:$0xff] }
  0x53   :  { %353 = vmatpush.msrb.mxu2 %v184_v58  ;;  %372 = vmatpush.msrb.mxu3 %v201_v59  ;;  %v481_v58 = vld [vmem:[#allocation7 + $0x178] sm:$0xff]  ;;  %v480_v59 = vld [vmem:[#allocation7 + $0x170] sm:$0xff] }
  0x54   :  { %313 = vmatpush.msrb.mxu0 %v152_v60  ;;  %332 = vmatpush.msrb.mxu1 %v169_v61  ;;  %v479_v60 = vld [vmem:[#allocation7 + $0x168] sm:$0xff]  ;;  %v478_v61 = vld [vmem:[#allocation7 + $0x160] sm:$0xff] }
  0x55   :  { %354 = vmatpush.msrb.mxu2 %v183_v62  ;;  %373 = vmatpush.msrb.mxu3 %v200_v63  ;;  %v477_v62 = vld [vmem:[#allocation7 + $0x158] sm:$0xff]  ;;  %v476_v63 = vld [vmem:[#allocation7 + $0x150] sm:$0xff] }
  0x56   :  { %355 = vmatmul.f32.vlgmr.msrb.gmra.mxu2 %v85_v0  ;;  %314 = vmatpush.msrb.mxu0 %v151_v1  ;;  %v475_v0 = vld [vmem:[#allocation7 + $0x148] sm:$0xff]  ;;  %v474_v1 = vld [vmem:[#allocation7 + $0x140] sm:$0xff] }
  0x57   :  { %333 = vmatpush.msrb.mxu1 %v168_v2  ;;  %374 = vmatpush.msrb.mxu3 %v199_v3  ;;  %v473_v2 = vld [vmem:[#allocation7 + $0x138] sm:$0xff]  ;;  %v472_v3 = vld [vmem:[#allocation7 + $0x130] sm:$0xff] }
  0x58   :  { %315 = vmatmul.f32.vlgmr.msrb.gmra.mxu0 %v83_v4  ;;  %375 = vmatmul.f32.vlgmr.msrb.gmra.mxu3 %v86_v5  ;;  %v471_v4 = vld [vmem:[#allocation7 + $0x128] sm:$0xff]  ;;  %v470_v5 = vld [vmem:[#allocation7 + $0x120] sm:$0xff] }
  0x59   :  { %334 = vmatpush.msrb.mxu1 %v167_v6  ;;  %401 = vmatpush.msra.mxu0 %v395_v7  ;;  %v469_v6 = vld [vmem:[#allocation7 + $0x118] sm:$0xff]  ;;  %v537_v7 = vld [vmem:[#allocation8 + $0x1] ss:$0 sm:$0xff] }
  0x5a   :  { %335 = vmatmul.f32.vlgmr.msrb.gmra.mxu1 %v84_v8  ;;  %487 = vmatpush.msra.mxu2 %v481_v58 }
  0x5b   :  { %402 = vmatpush.msra.mxu0 %v394_v9  ;;  %444 = vmatpush.msra.mxu1 %v438_v24 }
  0x5c   :  { %488 = vmatpush.msra.mxu2 %v480_v59 }
  0x5d   :  { %403 = vmatpush.msra.mxu0 %v393_v10  ;;  %445 = vmatpush.msra.mxu1 %v437_v25 }
  0x5e   :  { %489 = vmatpush.msra.mxu2 %v479_v60 }
  0x5f   :  { %404 = vmatpush.msra.mxu0 %v392_v11  ;;  %446 = vmatpush.msra.mxu1 %v436_v26  ;;  %v468_v11 = vld [vmem:[#allocation7 + $0x110] sm:$0xff] }
  0x60   :  { %490 = vmatpush.msra.mxu2 %v478_v61 }
  0x61   :  { %405 = vmatpush.msra.mxu0 %v391_v12  ;;  %447 = vmatpush.msra.mxu1 %v435_v27  ;;  %v467_v12 = vld [vmem:[#allocation7 + $0x108] sm:$0xff] }
  0x62   :  { %491 = vmatpush.msra.mxu2 %v477_v62 }
  0x63   :  { %406 = vmatpush.msra.mxu0 %v390_v13  ;;  %448 = vmatpush.msra.mxu1 %v434_v28  ;;  %v466_v13 = vld [vmem:[#allocation7 + $0x100] sm:$0xff] }
  0x64   :  { %492 = vmatpush.msra.mxu2 %v476_v63 }
  0x65   :  { %407 = vmatpush.msra.mxu0 %v389_v14  ;;  %449 = vmatpush.msra.mxu1 %v433_v30  ;;  %v538_v14 = vld [vmem:[#allocation8 + $0x2] ss:$0 sm:$0xff] }
  0x66   :  { %493 = vmatpush.msra.mxu2 %v475_v0 }
  0x67   :  { %408 = vmatpush.msra.mxu0 %v388_v15  ;;  %450 = vmatpush.msra.mxu1 %v432_v31 }
  0x68   :  { %494 = vmatpush.msra.mxu2 %v474_v1 }
  0x69   :  { %409 = vmatpush.msra.mxu0 %v387_v16  ;;  %451 = vmatpush.msra.mxu1 %v431_v34 }
  0x6a   :  { %495 = vmatpush.msra.mxu2 %v473_v2 }
  0x6b   :  { %410 = vmatpush.msra.mxu0 %v386_v17  ;;  %452 = vmatpush.msra.mxu1 %v430_v36 }
  0x6c   :  { %496 = vmatpush.msra.mxu2 %v472_v3 }
  0x6d   :  { %411 = vmatpush.msra.mxu0 %v385_v18  ;;  %453 = vmatpush.msra.mxu1 %v429_v39  ;;  %v539_v18 = vld [vmem:[#allocation8 + $0x3] ss:$0 sm:$0xff] }
  0x6e   :  { %497 = vmatpush.msra.mxu2 %v471_v4 }
  0x6f   :  { %412 = vmatpush.msra.mxu0 %v384_v19  ;;  %454 = vmatpush.msra.mxu1 %v428_v42 }
  0x70   :  { %498 = vmatpush.msra.mxu2 %v470_v5 }
  0x71   :  { %413 = vmatpush.msra.mxu0 %v383_v20  ;;  %455 = vmatpush.msra.mxu1 %v427_v44 }
  0x72   :  { %499 = vmatpush.msra.mxu2 %v469_v6 }
  0x73   :  { %414 = vmatpush.msra.mxu0 %v382_v21  ;;  %456 = vmatpush.msra.mxu1 %v426_v47 }
  0x74   :  { %500 = vmatpush.msra.mxu2 %v468_v11 }
  0x75   :  { %415 = vmatpush.msra.mxu0 %v381_v22  ;;  %457 = vmatpush.msra.mxu1 %v425_v55 }
  0x76   :  { %501 = vmatpush.msra.mxu2 %v467_v12 }
  0x77   :  { %416 = vmatpush.msra.mxu0 %v380_v23  ;;  %458 = vmatpush.msra.mxu1 %v424_v56 }
  0x78   :  { %502 = vmatpush.msra.mxu2 %v466_v13 }
  0x79   :  { %459 = vmatpush.msra.mxu1 %v423_v57 }
  0xcb   :  { %v236_v32 = vpop.f32.mrf.mxu0 }
  0xcc   :  { %v237_v33 = vadd.f32 %v536_v29, %v236_v32 }
  0xce   :  { %v256_v35 = vpop.f32.mrf.mxu1 }
  0xcf   :  { %v257_v37 = vadd.f32 %v256_v35, %v237_v33  ;;  %v276_v38 = vpop.f32.mrf.mxu2 }
  0xd1   :  { %v277_v40 = vadd.f32 %v276_v38, %v257_v37 }
  0xd2   :  { %v296_v41 = vpop.f32.mrf.mxu3 }
  0xd3   :  { %v297_v43 = vadd.f32 %v296_v41, %v277_v40 }
  0xd5   :  { %v316_v45 = vpop.f32.mrf.mxu0 }
  0xd6   :  { %v317_v46 = vadd.f32 %v316_v45, %v297_v43 }
  0xd7   :  { %v336_v48 = vpop.f32.mrf.mxu1 }
  0xd8   :  { %v337_v49 = vadd.f32 %v336_v48, %v317_v46 }
  0xd9   :  { %v356_v50 = vpop.f32.mrf.mxu2 }
  0xda   :  { %v357_v51 = vadd.f32 %v356_v50, %v337_v49 }
  0xdb   :  { %v376_v52 = vpop.f32.mrf.mxu3 }
  0xdc   :  { %v377_v53 = vadd.f32 %v376_v52, %v357_v51 }
  0xde   :  { %v379_v54 = vmax.f32 %v377_v53, 0.0 }
  0xe0   :  { %417 = vmatmul.f32.vlgmr.msra.gmra.mxu0 %v379_v54 }
 0x15d   :  { %v418_v8 = vpop.f32.mrf.mxu0 }
 0x15e   :  { %v419_v9 = vadd.f32 %v537_v7, %v418_v8 }
 0x160   :  { %v421_v10 = vmax.f32 %v419_v9, 0.0 }
 0x162   :  { %460 = vmatmul.f32.vlgmr.msra.gmra.mxu1 %v421_v10 }
 0x1df   :  { %v461_v15 = vpop.f32.mrf.mxu1 }
 0x1e0   :  { %v462_v16 = vadd.f32 %v538_v14, %v461_v15 }
 0x1e2   :  { %v464_v17 = vmax.f32 %v462_v16, 0.0 }
 0x1e4   :  { %503 = vmatmul.f32.vlgmr.msra.gmra.mxu2 %v464_v17 }
 0x267   :  { %v504_v19 = vpop.f32.mrf.mxu2 }
 0x268   :  { %v505_v20 = vadd.f32 %v539_v18, %v504_v19 }
 0x26a   :  { %507 = vst [vmem:[#allocation10] sm:$0xff] %v505_v20 }
 0x26b   :  { %518 = dma.vmem_to_hbm [thread:$0]  %s514_s3, 128, %s516_s13, [#allocation4]  }
 0x26c   :  { %666 = dma.done.wait [#allocation4], 128  }
 0x26d   :  { %667 = vsyncadd [#allocation4], 4294967168 }
 0x26e   :  { %523 = vsyncpa [#allocation3], 1 }
 0x26f   :  { %524 = vsyncpa [#allocation6], 1 }
 0x270   :  { %525 = vsyncpa [#allocation9], 1 }
 0x271   :  { %526 = vsyncpa [#allocation4], 1 }

</bundles_post_ra>
